<compile_context>
chip_gen: v7x
topology: tpu7x:2x2x1
jax: 0.10.0
libtpu: 0.0.40
codegen_flags: <defaults>
</compile_context>

<pallas_src>
import jax
import jax.numpy as jnp
import numpy as np
from jax import lax
from jax.experimental import pallas as pl
from jax.experimental.pallas import tpu as pltpu


def _adv_attn_kernel(q_ref, k_ref, v_ref,
                     wq_ref, bq_ref, wk_ref,
                     wv_ref, wo_ref, bout_ref,
                     cscale_ref,
                     out_ref):
    H = cscale_ref.shape[0]
    S = q_ref.shape[1]
    E = q_ref.shape[2]

    q = q_ref[0]          # (S, E)
    k = k_ref[0]
    v = v_ref[0]

    # Q / K projections (1/sqrt(D) folded into wq/bq; bk cancels in softmax).
    Q = jnp.dot(q, wq_ref[...], preferred_element_type=jnp.float32) + bq_ref[...]
    K = jnp.dot(k, wk_ref[...], preferred_element_type=jnp.float32)

    # Head-stacked V straight from a batched matmul with pre-split weights.
    # (bv folded into the output bias since softmax rows sum to 1.)
    vb = jnp.broadcast_to(v[None, :, :], (H, S, E))
    V3 = lax.dot_general(vb, wv_ref[...], (((2,), (1,)), ((0,), (0,))),
                         preferred_element_type=jnp.float32)          # (H,S,D)

    # Scores with the 1x1-conv head mixing folded in:
    #   mixed[g,s,t] = sum_e (Q[s,e] * cscale[g,e]) * K[t,e]
    #                = sum_h (I + Wc)[g,h] * (Q_h @ K_h^T)[s,t]
    # (the conv bias bc is constant over t -> cancels in softmax.)
    Qs = Q[None, :, :] * cscale_ref[...]                               # (H,S,E)
    Kb = jnp.broadcast_to(K[None, :, :], (H, S, E))
    mixed = lax.dot_general(Qs, Kb, (((2,), (2,)), ((0,), (0,))),
                            preferred_element_type=jnp.float32)        # (H,S,S)

    # TODO(synk): optional attention mask (masked_fill with -inf) not wired
    # up; this matches the PyTorch forward with mask=None.

    # Softmax over the key axis (stacked over heads).
    m = jnp.max(mixed, axis=-1, keepdims=True)
    e = jnp.exp(mixed - m)
    denom = jnp.sum(e, axis=-1, keepdims=True)
    w = e * pl.reciprocal(denom, approx=True)                          # EUP

    # Attention-weighted values + fused output projection (lane-dense).
    ctx = lax.dot_general(w, V3, (((2,), (1,)), ((0,), (0,))),
                          preferred_element_type=jnp.float32)          # (H,S,D)
    outh = lax.dot_general(ctx, wo_ref[...], (((2,), (1,)), ((0,), (0,))),
                           preferred_element_type=jnp.float32)         # (H,S,E)
    out_ref[0] = jnp.sum(outh, axis=0) + bout_ref[...]


def adversarial_attention(query, key, value, kparams):
    B, S, E = query.shape
    H = kparams["cscale"].shape[0]
    D = E // H

    seq_spec = pl.BlockSpec((1, S, E), lambda b: (b, 0, 0))
    ee_spec = pl.BlockSpec((E, E), lambda b: (0, 0))
    be_spec = pl.BlockSpec((1, E), lambda b: (0, 0))
    wv_spec = pl.BlockSpec((H, E, D), lambda b: (0, 0, 0))
    wo_spec = pl.BlockSpec((H, D, E), lambda b: (0, 0, 0))
    cs_spec = pl.BlockSpec((H, 1, E), lambda b: (0, 0, 0))

    return pl.pallas_call(
        _adv_attn_kernel,
        out_shape=jax.ShapeDtypeStruct((B, S, E), jnp.float32),
        grid=(B,),
        in_specs=[seq_spec, seq_spec, seq_spec,
                  ee_spec, be_spec, ee_spec,
                  wv_spec, wo_spec, be_spec,
                  cs_spec],
        out_specs=seq_spec,
        compiler_params=pltpu.CompilerParams(dimension_semantics=("parallel",)),
    )(query, key, value,
      kparams["wq"], kparams["bq"], kparams["wk"],
      kparams["wv_h"], kparams["wo_h"], kparams["bout"],
      kparams["cscale"])


def prepare_params(params, num_heads):
    """One-time transform of the PyTorch-style params into kernel layout."""
    E = params["wq_t"].shape[0]
    D = E // num_heads
    scale = jnp.float32(1.0 / (D ** 0.5))
    wc_eff = jnp.eye(num_heads, dtype=jnp.float32) + params["wc"]      # I + Wc
    return {
        # fold the 1/sqrt(D) score scale into the Q projection
        "wq": params["wq_t"] * scale,
        "bq": params["bq"] * scale,
        # bk is constant along the softmax (key) axis -> dropped
        "wk": params["wk_t"],
        # per-head split of the V / O projections (no in-kernel reshapes)
        "wv_h": params["wv_t"].reshape(E, num_heads, D).transpose(1, 0, 2),  # (H,E,D)
        "wo_h": params["wo_t"].reshape(num_heads, D, E),                     # (H,D,E)
        # softmax rows sum to 1 -> the V bias collapses into the output bias
        "bout": params["bo"] + params["bv"] @ params["wo_t"],                # (1,E)
        # conv mixing folded into the score matmul (conv bias bc cancels)
        "cscale": jnp.repeat(wc_eff, D, axis=1)[:, None, :],                 # (H,1,E)
    }


def reference(query, key, value, params, num_heads):
    """Pure-JAX mirror of the PyTorch forward (mask=None)."""
    B, S, E = query.shape
    D = E // num_heads
    Q = (query @ params["wq_t"] + params["bq"]).reshape(B, S, num_heads, D).transpose(0, 2, 1, 3)
    K = (key @ params["wk_t"] + params["bk"]).reshape(B, S, num_heads, D).transpose(0, 2, 1, 3)
    V = (value @ params["wv_t"] + params["bv"]).reshape(B, S, num_heads, D).transpose(0, 2, 1, 3)
    scores = jnp.einsum('bhsd,bhtd->bhst', Q, K,
                        preferred_element_type=jnp.float32) / (D ** 0.5)
    noise = jnp.einsum('gh,bhst->bgst', params["wc"], scores) \
        + params["bc"][None, :, None, None]
    scores = scores + noise
    w = jax.nn.softmax(scores, axis=-1)
    out = jnp.einsum('bhst,bhtd->bhsd', w, V,
                     preferred_element_type=jnp.float32)
    out = out.transpose(0, 2, 1, 3).reshape(B, S, E)
    return out @ params["wo_t"] + params["bo"]


def init_params(key, embed_size, num_heads):
    ks = jax.random.split(key, 10)

    def lin_w(k):   # PyTorch nn.Linear weight is (out, in); store transposed.
        return (jax.random.normal(k, (embed_size, embed_size), jnp.float32) * 0.1).T

    def lin_b(k):
        return jax.random.normal(k, (1, embed_size), jnp.float32) * 0.1

    # Conv2d(num_heads, num_heads, kernel_size=1): weight (H, H, 1, 1) -> (H, H)
    wc = jax.random.normal(ks[8], (num_heads, num_heads, 1, 1), jnp.float32) * 0.1
    bc = jax.random.normal(ks[9], (num_heads,), jnp.float32) * 0.1
    return {
        "wq_t": lin_w(ks[0]), "bq": lin_b(ks[1]),
        "wk_t": lin_w(ks[2]), "bk": lin_b(ks[3]),
        "wv_t": lin_w(ks[4]), "bv": lin_b(ks[5]),
        "wo_t": lin_w(ks[6]), "bo": lin_b(ks[7]),
        "wc": wc[:, :, 0, 0], "bc": bc,
    }


if __name__ == "__main__":
    B, S, E, H = 2, 8, 32, 4   # embed_size=32, num_heads=4, head_dim=8

    root = jax.random.PRNGKey(0)
    k_q, k_k, k_v, k_p = jax.random.split(root, 4)
    query = jax.random.normal(k_q, (B, S, E), jnp.float32)
    key = jax.random.normal(k_k, (B, S, E), jnp.float32)
    value = jax.random.normal(k_v, (B, S, E), jnp.float32)
    params = init_params(k_p, E, H)
    kparams = prepare_params(params, H)   # one-time, outside the kernel call

    out = adversarial_attention(query, key, value, kparams)
    out = jax.block_until_ready(out)

    ref = jax.block_until_ready(reference(query, key, value, params, H))
    np.testing.assert_allclose(np.asarray(out), np.asarray(ref),
                               rtol=2e-3, atol=2e-3)

    print("KERNEL_OK")
</pallas_src>

<mosaic_0001>
module attributes {stable_mosaic.version = 11 : i64} {
  func.func @_adv_attn_kernel(%arg0: i32, %arg1: memref<1x8x32xf32, #tpu.memory_space<vmem>>, %arg2: memref<1x8x32xf32, #tpu.memory_space<vmem>>, %arg3: memref<1x8x32xf32, #tpu.memory_space<vmem>>, %arg4: memref<32x32xf32, #tpu.memory_space<vmem>>, %arg5: memref<1x32xf32, #tpu.memory_space<vmem>>, %arg6: memref<32x32xf32, #tpu.memory_space<vmem>>, %arg7: memref<4x32x8xf32, #tpu.memory_space<vmem>>, %arg8: memref<4x8x32xf32, #tpu.memory_space<vmem>>, %arg9: memref<1x32xf32, #tpu.memory_space<vmem>>, %arg10: memref<4x1x32xf32, #tpu.memory_space<vmem>>, %arg11: memref<1x8x32xf32, #tpu.memory_space<vmem>>) attributes {dimension_semantics = [#tpu.dimension_semantics<parallel>], iteration_bounds = array<i64: 2>, scalar_prefetch = 0 : i64, scratch_operands = 0 : i64, tpu.core_type = #tpu.core_type<tc>, window_params = [{transform_indices = @transform_0, window_bounds = array<i64: 1, 8, 32>}, {transform_indices = @transform_1, window_bounds = array<i64: 1, 8, 32>}, {transform_indices = @transform_2, window_bounds = array<i64: 1, 8, 32>}, {pipeline_mode = #tpu.pipeline_mode<synchronous>, transform_indices = @transform_3, window_bounds = array<i64: 32, 32>}, {pipeline_mode = #tpu.pipeline_mode<synchronous>, transform_indices = @transform_4, window_bounds = array<i64: 1, 32>}, {pipeline_mode = #tpu.pipeline_mode<synchronous>, transform_indices = @transform_5, window_bounds = array<i64: 32, 32>}, {pipeline_mode = #tpu.pipeline_mode<synchronous>, transform_indices = @transform_6, window_bounds = array<i64: 4, 32, 8>}, {pipeline_mode = #tpu.pipeline_mode<synchronous>, transform_indices = @transform_7, window_bounds = array<i64: 4, 8, 32>}, {pipeline_mode = #tpu.pipeline_mode<synchronous>, transform_indices = @transform_8, window_bounds = array<i64: 1, 32>}, {pipeline_mode = #tpu.pipeline_mode<synchronous>, transform_indices = @transform_9, window_bounds = array<i64: 4, 1, 32>}, {transform_indices = @transform_10, window_bounds = array<i64: 1, 8, 32>}]} {
    %c0 = arith.constant 0 : index
    %c0_0 = arith.constant 0 : index
    %c0_1 = arith.constant 0 : index
    %0 = vector.load %arg1[%c0, %c0_0, %c0_1] : memref<1x8x32xf32, #tpu.memory_space<vmem>>, vector<1x8x32xf32>
    %1 = vector.shape_cast %0 : vector<1x8x32xf32> to vector<8x32xf32>
    %c0_2 = arith.constant 0 : index
    %c0_3 = arith.constant 0 : index
    %c0_4 = arith.constant 0 : index
    %2 = vector.load %arg2[%c0_2, %c0_3, %c0_4] : memref<1x8x32xf32, #tpu.memory_space<vmem>>, vector<1x8x32xf32>
    %3 = vector.shape_cast %2 : vector<1x8x32xf32> to vector<8x32xf32>
    %c0_5 = arith.constant 0 : index
    %c0_6 = arith.constant 0 : index
    %c0_7 = arith.constant 0 : index
    %4 = vector.load %arg3[%c0_5, %c0_6, %c0_7] : memref<1x8x32xf32, #tpu.memory_space<vmem>>, vector<1x8x32xf32>
    %5 = vector.shape_cast %4 : vector<1x8x32xf32> to vector<8x32xf32>
    %c0_8 = arith.constant 0 : index
    %c0_9 = arith.constant 0 : index
    %6 = vector.load %arg4[%c0_8, %c0_9] : memref<32x32xf32, #tpu.memory_space<vmem>>, vector<32x32xf32>
    %cst = arith.constant dense<0.000000e+00> : vector<8x32xf32>
    %7 = tpu.matmul %1, %6, %cst {dimension_numbers = #tpu.dot_dimension_numbers<[1], [0], [0], [1], [0, 0, 1, 1], [], []>} : vector<8x32xf32>, vector<32x32xf32>, vector<8x32xf32> -> vector<8x32xf32>
    %c0_10 = arith.constant 0 : index
    %c0_11 = arith.constant 0 : index
    %8 = vector.load %arg5[%c0_10, %c0_11] : memref<1x32xf32, #tpu.memory_space<vmem>>, vector<1x32xf32>
    %9 = vector.broadcast %8 : vector<1x32xf32> to vector<8x32xf32>
    %10 = arith.addf %7, %9 : vector<8x32xf32>
    %c0_12 = arith.constant 0 : index
    %c0_13 = arith.constant 0 : index
    %11 = vector.load %arg6[%c0_12, %c0_13] : memref<32x32xf32, #tpu.memory_space<vmem>>, vector<32x32xf32>
    %cst_14 = arith.constant dense<0.000000e+00> : vector<8x32xf32>
    %12 = tpu.matmul %3, %11, %cst_14 {dimension_numbers = #tpu.dot_dimension_numbers<[1], [0], [0], [1], [0, 0, 1, 1], [], []>} : vector<8x32xf32>, vector<32x32xf32>, vector<8x32xf32> -> vector<8x32xf32>
    %13 = vector.shape_cast %5 : vector<8x32xf32> to vector<1x8x32xf32>
    %14 = vector.shape_cast %13 : vector<1x8x32xf32> to vector<1x8x32xf32>
    %15 = vector.broadcast %14 : vector<1x8x32xf32> to vector<4x8x32xf32>
    %c0_15 = arith.constant 0 : index
    %c0_16 = arith.constant 0 : index
    %c0_17 = arith.constant 0 : index
    %16 = vector.load %arg7[%c0_15, %c0_16, %c0_17] : memref<4x32x8xf32, #tpu.memory_space<vmem>>, vector<4x32x8xf32>
    %cst_18 = arith.constant dense<0.000000e+00> : vector<4x8x8xf32>
    %17 = tpu.matmul %15, %16, %cst_18 {dimension_numbers = #tpu.dot_dimension_numbers<[2], [1], [1], [2], [0, 0, 0, 1, 1, 2], [0], [0]>} : vector<4x8x32xf32>, vector<4x32x8xf32>, vector<4x8x8xf32> -> vector<4x8x8xf32>
    %18 = vector.shape_cast %10 : vector<8x32xf32> to vector<1x8x32xf32>
    %c0_19 = arith.constant 0 : index
    %c0_20 = arith.constant 0 : index
    %c0_21 = arith.constant 0 : index
    %19 = vector.load %arg10[%c0_19, %c0_20, %c0_21] : memref<4x1x32xf32, #tpu.memory_space<vmem>>, vector<4x1x32xf32>
    %20 = vector.broadcast %18 : vector<1x8x32xf32> to vector<4x8x32xf32>
    %21 = vector.broadcast %19 : vector<4x1x32xf32> to vector<4x8x32xf32>
    %22 = arith.mulf %20, %21 : vector<4x8x32xf32>
    %23 = vector.shape_cast %12 : vector<8x32xf32> to vector<1x8x32xf32>
    %24 = vector.shape_cast %23 : vector<1x8x32xf32> to vector<1x8x32xf32>
    %25 = vector.broadcast %24 : vector<1x8x32xf32> to vector<4x8x32xf32>
    %cst_22 = arith.constant dense<0.000000e+00> : vector<4x8x8xf32>
    %26 = tpu.matmul %22, %25, %cst_22 {dimension_numbers = #tpu.dot_dimension_numbers<[2], [2], [1], [1], [0, 0, 0, 1, 1, 1], [0], [0]>} : vector<4x8x32xf32>, vector<4x8x32xf32>, vector<4x8x8xf32> -> vector<4x8x8xf32>
    %cst_23 = arith.constant dense<0xFF800000> : vector<4x8xf32>
    %27 = vector.multi_reduction <maximumf>, %26, %cst_23 [2] : vector<4x8x8xf32> to vector<4x8xf32>
    %28 = vector.shape_cast %27 : vector<4x8xf32> to vector<4x8x1xf32>
    %29 = vector.broadcast %28 : vector<4x8x1xf32> to vector<4x8x8xf32>
    %30 = arith.subf %26, %29 : vector<4x8x8xf32>
    %31 = math.exp %30 : vector<4x8x8xf32>
    %cst_24 = arith.constant dense<0.000000e+00> : vector<4x8xf32>
    %32 = vector.multi_reduction <add>, %31, %cst_24 [2] : vector<4x8x8xf32> to vector<4x8xf32>
    %33 = vector.shape_cast %32 : vector<4x8xf32> to vector<4x8x1xf32>
    %34 = tpu.reciprocal %33 {approx = true} : vector<4x8x1xf32> -> vector<4x8x1xf32>
    %35 = vector.broadcast %34 : vector<4x8x1xf32> to vector<4x8x8xf32>
    %36 = arith.mulf %31, %35 : vector<4x8x8xf32>
    %cst_25 = arith.constant dense<0.000000e+00> : vector<4x8x8xf32>
    %37 = tpu.matmul %36, %17, %cst_25 {dimension_numbers = #tpu.dot_dimension_numbers<[2], [1], [1], [2], [0, 0, 0, 1, 1, 2], [0], [0]>} : vector<4x8x8xf32>, vector<4x8x8xf32>, vector<4x8x8xf32> -> vector<4x8x8xf32>
    %c0_26 = arith.constant 0 : index
    %c0_27 = arith.constant 0 : index
    %c0_28 = arith.constant 0 : index
    %38 = vector.load %arg8[%c0_26, %c0_27, %c0_28] : memref<4x8x32xf32, #tpu.memory_space<vmem>>, vector<4x8x32xf32>
    %cst_29 = arith.constant dense<0.000000e+00> : vector<4x8x32xf32>
    %39 = tpu.matmul %37, %38, %cst_29 {dimension_numbers = #tpu.dot_dimension_numbers<[2], [1], [1], [2], [0, 0, 0, 1, 1, 2], [0], [0]>} : vector<4x8x8xf32>, vector<4x8x32xf32>, vector<4x8x32xf32> -> vector<4x8x32xf32>
    %cst_30 = arith.constant dense<0.000000e+00> : vector<8x32xf32>
    %40 = vector.multi_reduction <add>, %39, %cst_30 [0] : vector<4x8x32xf32> to vector<8x32xf32>
    %c0_31 = arith.constant 0 : index
    %c0_32 = arith.constant 0 : index
    %41 = vector.load %arg9[%c0_31, %c0_32] : memref<1x32xf32, #tpu.memory_space<vmem>>, vector<1x32xf32>
    %42 = vector.broadcast %41 : vector<1x32xf32> to vector<8x32xf32>
    %43 = arith.addf %40, %42 : vector<8x32xf32>
    %c0_33 = arith.constant 0 : index
    %c0_34 = arith.constant 0 : index
    %c0_35 = arith.constant 0 : index
    %44 = vector.load %arg11[%c0_33, %c0_34, %c0_35] : memref<1x8x32xf32, #tpu.memory_space<vmem>>, vector<1x8x32xf32>
    %45 = vector.shape_cast %44 : vector<1x8x32xf32> to vector<8x32xf32>
    %46 = vector.shape_cast %43 : vector<8x32xf32> to vector<1x8x32xf32>
    tpu.vector_store %arg11[%c0_33, %c0_34, %c0_35], %46 {strides = array<i32>} : memref<1x8x32xf32, #tpu.memory_space<vmem>>, vector<1x8x32xf32>,
    return
  }
  func.func @transform_0(%arg0: i32) -> (i32, i32, i32) {
    %c0_i32 = arith.constant 0 : i32
    %c0_i32_0 = arith.constant 0 : i32
    %c0_i32_1 = arith.constant 0 : i32
    return %arg0, %c0_i32, %c0_i32_0 : i32, i32, i32
  }
  func.func @transform_1(%arg0: i32) -> (i32, i32, i32) {
    %c0_i32 = arith.constant 0 : i32
    %c0_i32_0 = arith.constant 0 : i32
    %c0_i32_1 = arith.constant 0 : i32
    return %arg0, %c0_i32, %c0_i32_0 : i32, i32, i32
  }
  func.func @transform_2(%arg0: i32) -> (i32, i32, i32) {
    %c0_i32 = arith.constant 0 : i32
    %c0_i32_0 = arith.constant 0 : i32
    %c0_i32_1 = arith.constant 0 : i32
    return %arg0, %c0_i32, %c0_i32_0 : i32, i32, i32
  }
  func.func @transform_3(%arg0: i32) -> (i32, i32) {
    %c0_i32 = arith.constant 0 : i32
    %c0_i32_0 = arith.constant 0 : i32
    %c0_i32_1 = arith.constant 0 : i32
    return %c0_i32, %c0_i32_0 : i32, i32
  }
  func.func @transform_4(%arg0: i32) -> (i32, i32) {
    %c0_i32 = arith.constant 0 : i32
    %c0_i32_0 = arith.constant 0 : i32
    %c0_i32_1 = arith.constant 0 : i32
    return %c0_i32, %c0_i32_0 : i32, i32
  }
  func.func @transform_5(%arg0: i32) -> (i32, i32) {
    %c0_i32 = arith.constant 0 : i32
    %c0_i32_0 = arith.constant 0 : i32
    %c0_i32_1 = arith.constant 0 : i32
    return %c0_i32, %c0_i32_0 : i32, i32
  }
  func.func @transform_6(%arg0: i32) -> (i32, i32, i32) {
    %c0_i32 = arith.constant 0 : i32
    %c0_i32_0 = arith.constant 0 : i32
    %c0_i32_1 = arith.constant 0 : i32
    %c0_i32_2 = arith.constant 0 : i32
    return %c0_i32, %c0_i32_0, %c0_i32_1 : i32, i32, i32
  }
  func.func @transform_7(%arg0: i32) -> (i32, i32, i32) {
    %c0_i32 = arith.constant 0 : i32
    %c0_i32_0 = arith.constant 0 : i32
    %c0_i32_1 = arith.constant 0 : i32
    %c0_i32_2 = arith.constant 0 : i32
    return %c0_i32, %c0_i32_0, %c0_i32_1 : i32, i32, i32
  }
  func.func @transform_8(%arg0: i32) -> (i32, i32) {
    %c0_i32 = arith.constant 0 : i32
    %c0_i32_0 = arith.constant 0 : i32
    %c0_i32_1 = arith.constant 0 : i32
    return %c0_i32, %c0_i32_0 : i32, i32
  }
  func.func @transform_9(%arg0: i32) -> (i32, i32, i32) {
    %c0_i32 = arith.constant 0 : i32
    %c0_i32_0 = arith.constant 0 : i32
    %c0_i32_1 = arith.constant 0 : i32
    %c0_i32_2 = arith.constant 0 : i32
    return %c0_i32, %c0_i32_0, %c0_i32_1 : i32, i32, i32
  }
  func.func @transform_10(%arg0: i32) -> (i32, i32, i32) {
    %c0_i32 = arith.constant 0 : i32
    %c0_i32_0 = arith.constant 0 : i32
    %c0_i32_1 = arith.constant 0 : i32
    return %arg0, %c0_i32, %c0_i32_0 : i32, i32, i32
  }
}

</mosaic_0001>

<bundles_post_ra>
// kernel: tpu_custom_call.1
= control target key start
LH: loop header
LB: loop body
LE: loop exit
PB: predicated region body
PF: predicated region fallthrough
CT: control target
= control target key end

     0   :  { %s2674_s0 = inlined_call_operand.vmem [shape: f32[2,8,32], index: 0, kind: input, shape index: {}]   ;;  %s2675_s1 = inlined_call_operand.vmem [shape: f32[2,8,32], index: 1, kind: input, shape index: {}]   ;;  %s2676_s2 = inlined_call_operand.vmem [shape: f32[2,8,32], index: 2, kind: input, shape index: {}]   ;;  %s2677_s3 = inlined_call_operand.vmem [shape: f32[32,32], index: 3, kind: input, shape index: {}]   ;;  %s2678_s4 = inlined_call_operand.vmem [shape: f32[1,32], index: 4, kind: input, shape index: {}]   ;;  %s2679_s5 = inlined_call_operand.vmem [shape: f32[32,32], index: 5, kind: input, shape index: {}]   ;;  %s2680_s6 = inlined_call_operand.vmem [shape: f32[4,32,8], index: 6, kind: input, shape index: {}]   ;;  %s2681_s7 = inlined_call_operand.vmem [shape: f32[4,8,32], index: 7, kind: input, shape index: {}]   ;;  %s2682_s8 = inlined_call_operand.vmem [shape: f32[1,32], index: 8, kind: input, shape index: {}]   ;;  %s2683_s9 = inlined_call_operand.vmem [shape: f32[4,1,32], index: 9, kind: input, shape index: {}]   ;;  %s2684_s10 = inlined_call_operand.hbm [shape: f32[2,8,32], index: 10, kind: output, shape index: {}]  }
   0x1   :  { %2685 = sst [smem:[#allocation5_spill]] %s2677_s3 }
   0x2   :  { %15 = vsyncpa [#allocation3], 0 }
   0x3   :  { %17 = vsyncpa [#allocation3 + $0x1], 0  ;;  %s2363_s13 = smov 0   ;;  %s2365_s14 = smov 0  }
   0x4   :  { %s2367_s15 = smov 0   ;;  %s2369_s16 = smov 0  }
   0x5 LB: > { %s2384_s17 = sadd.s32 4294967295, %s2302_s16   ;;  %s1926_s18 = sadd.s32 4294967294, %s2302_s16   ;;  %s2302_s16 = sphi %s2369_s16, %s2692_s16   ;;  %s2298_s15 = sphi %s2367_s15, %s2691_s15   ;;  %s2294_s14 = sphi %s2365_s14, %s2690_s14   ;;  %s2290_s13 = sphi %s2363_s13, %s2689_s13  }
   0x6   : > { %s2388_s19 = sadd.s32 1, %s2302_s16   ;;  %s255_s20 = sadd.s32 1, %s2298_s15 }
   0x7   : > { %s252_s21 = ssub.s32 %s2302_s16, %s2388_s19  ;;  %p265_p0 = scmp.ne.s32.totalorder %s2298_s15, %s2294_s14 }
   0x8   : > { %p253_p1 = scmp.eq.s32.totalorder %s252_s21, 0  ;;  %p266_p2 = scmp.eq.s32.totalorder %s2384_s17, 1 }
   0x9   : > { %p271_p3 = scmp.ne.s32.totalorder %s2294_s14, %s2290_s13  ;;  %p272_p4 = scmp.eq.s32.totalorder %s1926_s18, 1 }
   0xa   : > { %s2399_s22 = scalar_select %p253_p1, %s2298_s15, %s255_s20  }
   0xb   : > { %p2401_p5 = por %p266_p2, %p265_p0  ;;  %p2405_p6 = por %p272_p4, %p271_p3 }
   0xc   : > { %p1929_p7 = scmp.ge.s32.totalorder %s2302_s16, 1  ;;  %p332_p8 = scmp.lt.s32.totalorder %s2302_s16, 3 }
   0xe   : > { %p333_p9 = pnand %p1929_p7, %p332_p8 }
   0xf   : > { %s2688_s3 = sld [smem:[#allocation5_spill]] (!%p333_p9)  ;;  %v477_v2 = vld [vmem:[%s2679_s5] sm:$0xff] (!%p333_p9)  ;;  %v2304_v3 = vmov (!%p333_p9), 0.0|0.0   ;;  %v478_v5 = vld [vmem:[%s2679_s5 + $0x8] sm:$0xff] (!%p333_p9)  ;;  %p377_p10 = scmp.lt.s32.totalorder (!%p333_p9), %s2384_s17, 1  ;;  %v479_v9 = vld [vmem:[%s2679_s5 + $0x10] sm:$0xff] (!%p333_p9) }
  0x10   : > { %336 = sbr.rel (%p333_p9) target bundleno = 1224 (0x4c8), region = 60  ;;  %2146 = vmatprep.subr.bf16.mxu0 (!%p333_p9), %v2304_v3  ;;  %2152 = vmatprep.subr.bf16.mxu1 (!%p333_p9), %v2304_v3  ;;  %v2153_v8 = vpack.c.bf16 (!%p333_p9), %v478_v5, %v477_v2  ;;  %v480_v10 = vld [vmem:[%s2679_s5 + $0x18] sm:$0xff] (!%p333_p9)  ;;  %vm2305_vm0 = vmmov (!%p333_p9), 0   ;;  %v2306_v11 = vmov (!%p333_p9), 0.0   ;;  %v554_v14 = vld [vmem:[%s2680_s6] sm:$0xff] (!%p333_p9)  ;;  %v555_v15 = vld [vmem:[%s2680_s6 + $0x8] sm:$0xff] (!%p333_p9) }
  0x11   : > { %2028 = vmatprep.mubr.msk.f32.mxu0 (!%p333_p9), %vm2305_vm0, %v2306_v11  ;;  %2039 = vmatprep.mubr.msk.f32.mxu1 (!%p333_p9), %vm2305_vm0, %v2306_v11  ;;  %v2156_v13 = vpack.c.bf16 (!%p333_p9), %v480_v10, %v479_v9  ;;  %v558_v16 = vld [vmem:[%s2680_s6 + $0x20] sm:$0xff] (!%p333_p9)  ;;  %v559_v17 = vld [vmem:[%s2680_s6 + $0x28] sm:$0xff] (!%p333_p9)  ;;  %vm403_vm1 = vcmask (!%p333_p9), 261120   ;;  %v2159_v19 = vpack.c.bf16 (!%p333_p9), %v555_v15, %v554_v14  ;;  %v556_v22 = vld [vmem:[%s2680_s6 + $0x10] sm:$0xff] (!%p333_p9)  ;;  %vm1180_vm2 = vcmask (!%p333_p9), 64512   ;;  %s374_s18 = sand.u32 (!%p333_p9), 1, %s2294_s14  }
  0x12   : > { %2154 = vmatpush3.bf16.msra.mxu1 (!%p333_p9), %v2153_v8  ;;  %v2165_v21 = vpack.c.bf16 (!%p333_p9), %v559_v17, %v558_v16  ;;  %v557_v23 = vld [vmem:[%s2680_s6 + $0x18] sm:$0xff] (!%p333_p9)  ;;  %v560_v24 = vld [vmem:[%s2680_s6 + $0x30] sm:$0xff] (!%p333_p9)  ;;  %v562_v28 = vld [vmem:[%s2680_s6 + $0x40] sm:$0xff] (!%p333_p9) }
  0x13   : > { %2155 = vmatprep.subr.bf16.mxu1 (!%p333_p9), %v2304_v3  ;;  %v561_v25 = vld [vmem:[%s2680_s6 + $0x38] sm:$0xff] (!%p333_p9)  ;;  %v2162_v26 = vpack.c.bf16 (!%p333_p9), %v557_v23, %v556_v22  ;;  %v563_v29 = vld [vmem:[%s2680_s6 + $0x48] sm:$0xff] (!%p333_p9)  ;;  %v566_v30 = vld [vmem:[%s2680_s6 + $0x60] sm:$0xff] (!%p333_p9) }
  0x14   : > { %v2168_v27 = vpack.c.bf16 (!%p333_p9), %v561_v25, %v560_v24  ;;  %v567_v31 = vld [vmem:[%s2680_s6 + $0x68] sm:$0xff] (!%p333_p9)  ;;  %v2171_v33 = vpack.c.bf16 (!%p333_p9), %v563_v29, %v562_v28  ;;  %v564_v35 = vld [vmem:[%s2680_s6 + $0x50] sm:$0xff] (!%p333_p9)  ;;  %v565_v36 = vld [vmem:[%s2680_s6 + $0x58] sm:$0xff] (!%p333_p9) }
  0x15   : > { %v392_v0 = vld [vmem:[%s2688_s3] sm:$0xff] (!%p333_p9)  ;;  %v393_v1 = vld [vmem:[%s2688_s3 + $0x8] sm:$0xff] (!%p333_p9)  ;;  %v394_v6 = vld [vmem:[%s2688_s3 + $0x10] sm:$0xff] (!%p333_p9)  ;;  %v2177_v34 = vpack.c.bf16 (!%p333_p9), %v567_v31, %v566_v30  ;;  %v2174_v39 = vpack.c.bf16 (!%p333_p9), %v565_v36, %v564_v35 }
  0x16   : > { %v2147_v4 = vpack.c.bf16 (!%p333_p9), %v393_v1, %v392_v0  ;;  %v395_v7 = vld [vmem:[%s2688_s3 + $0x18] sm:$0xff] (!%p333_p9)  ;;  %2157 = vmatpush3.bf16.msra.mxu1 (!%p333_p9), %v2156_v13  ;;  %v568_v37 = vld [vmem:[%s2680_s6 + $0x70] sm:$0xff] (!%p333_p9)  ;;  %v1934_v41 = vld [vmem:[%s2678_s4] ss:$0 sm:$0xff] (!%p333_p9) }
  0x17   : > { %v2150_v12 = vpack.c.bf16 %v395_v7, %v394_v6  ;;  %s378_s30 = scalar_select %p377_p10, %s2384_s17, 1  ;;  %2164 = vmatprep.subr.bf16.mxu1 %v2304_v3  ;;  %v569_v38 = vld [vmem:[%s2680_s6 + $0x78] sm:$0xff]  ;;  %v1941_v43 = vld [vmem:[%s2683_s9] ss:$0 sm:$0xff]  ;;  %v1942_v44 = vld [vmem:[%s2683_s9 + $0x1] ss:$0 sm:$0xff] }
  0x18   : > { %2148 = vmatpush3.bf16.msra.mxu0 %v2147_v4  ;;  %v2180_v40 = vpack.c.bf16 %v569_v38, %v568_v37  ;;  %v1943_v51 = vld [vmem:[%s2683_s9 + $0x2] ss:$0 sm:$0xff]  ;;  %v1944_v52 = vld [vmem:[%s2683_s9 + $0x3] ss:$0 sm:$0xff] }
  0x19   : > { %2149 = vmatprep.subr.bf16.mxu0 %v2304_v3  ;;  %s2451_s21 = sshll.u32 %s378_s30, 3  ;;  %s1930_s30 = sshll.u32 %s374_s18, 3 }
  0x1a   : > { %s380_s12 = scalar_lea.vmem %s2674_s0, %s2451_s21  ;;  %s384_s3 = scalar_lea.vmem %s2675_s1, %s2451_s21 }
  0x1b   : > { %v389_v18 = vld [vmem:[%s380_s12] sm:$0xff]  ;;  %s388_s20 = scalar_lea.vmem %s2676_s2, %s2451_s21  ;;  %s376_s27 = scalar_lea.vmem [#allocation2], %s1930_s30 }
  0x1c   : > { %2151 = vmatpush3.bf16.msra.mxu0 %v2150_v12  ;;  %v390_v20 = vld [vmem:[%s384_s3] sm:$0xff]  ;;  %s1843_s28 = sshll.u32 %s376_s27, 4  ;;  %s1830_s21 = scalar_lea.sflag [#allocation3], %s374_s18  ;;  %s2633_s28 = int_to_ptr.vmem [resolvable:$true] %s1843_s28 }
  0x1d   : > { %2158 = vmatprep.subr.bf16.mxu0 %v2304_v3  ;;  %2040 = vmatmul.mubr.msk.f32.vlgmr.msra.gmra.mrb[0].mxu1 %vm403_vm1, %v390_v20  ;;  %v391_v32 = vld [vmem:[%s388_s20] sm:$0xff]  ;;  %s1963_s20 = sshll.u32 %s2384_s17, 7  ;;  %s2240_s3 = scalar_lea.vmem %s2633_s28, 128 }
  0x1e   : > { %2166 = vmatpush3.bf16.msra.mxu1 %v2165_v21  ;;  %2061 = vmatprep.mubr.msk.f32.mxu1 %vm2305_vm0, %v2306_v11  ;;  %s2631_s12 = scalar_lea.hbm %s2684_s10, %s1963_s20  ;;  %p2241_p11 = scmp.ne.s32.totalorder %s2633_s28, %s2240_s3 }
  0x1f   : > { %2029 = vmatmul.mubr.msk.f32.vlgmr.msra.gmra.mrb[0].mxu0 %vm403_vm1, %v389_v18  ;;  %2167 = vmatprep.subr.bf16.mxu1 %v2304_v3  ;;  %s2307_s17 = smov [#allocation2]  }
  0x20   : > { %2160 = vmatpush3.bf16.msra.mxu0 %v2159_v19  ;;  %2050 = vmatprep.mubr.msk.f32.mxu0 %vm2305_vm0, %v2306_v11  ;;  %p2242_p12 = pnand %p2241_p11, %p2401_p5  ;;  %s2244_s30 = sshll.u32 %s2307_s17, 4  ;;  %s2245_s30 = int_to_ptr.vmem [resolvable:$false] %s2244_s30 }
  0x21   : > { %2161 = vmatprep.subr.bf16.mxu0 %v2304_v3  ;;  %s2246_s25 = scalar_lea.vmem %s2245_s30, 256  ;;  %p2247_p0 = scmp.lt.s32.totalorder %s2633_s28, %s2245_s30 }
  0x22   : > { %2169 = vmatpush3.bf16.msra.mxu1 %v2168_v27  ;;  %p2243_p13 = pneg %p2242_p12  ;;  %p2248_p1 = scmp.lt.s32.totalorder %s2246_s25, %s2240_s3 }
  0x23   : > { %2176 = vmatprep.subr.bf16.mxu1 %v2304_v3 }
  0x24   : > { %2163 = vmatpush3.bf16.msra.mxu0 %v2162_v26  ;;  %p2249_p2 = por %p2248_p1, %p2247_p0 }
  0x25   : > { %2170 = vmatprep.subr.bf16.mxu0 %v2304_v3  ;;  %2062 = vmatmul.mubr.msk.f32.vlgmr.msra.gmra.mrb[2].mxu1 %vm403_vm1, %v391_v32 }
  0x26   : > { %2178 = vmatpush3.bf16.msra.mxu1 %v2177_v34  ;;  %2083 = vmatprep.mubr.msk.f32.mxu1 %vm2305_vm0, %v2306_v11  ;;  %p2250_p3 = pnand %p2249_p2, %p2243_p13 }
  0x27   : > { %2051 = vmatmul.mubr.msk.f32.vlgmr.msra.gmra.mrb[2].mxu0 %vm403_vm1, %v391_v32  ;;  %2179 = vmatprep.subr.bf16.mxu1 %v2304_v3 }
  0x28   : > { %2172 = vmatpush3.bf16.msra.mxu0 %v2171_v33  ;;  %2072 = vmatprep.mubr.msk.f32.mxu0 %vm2305_vm0, %v2306_v11 }
  0x29   : > { %2173 = vmatprep.subr.bf16.mxu0 %v2304_v3 }
  0x2a   : > { %2181 = vmatpush3.bf16.msra.mxu1 %v2180_v40 }
  0x2b   : > { %2091 = vmatprep.subr.mxu1 %v2306_v11 }
  0x2c   : > { %2175 = vmatpush3.bf16.msra.mxu0 %v2174_v39 }
  0x2d   : > { %2086 = vmatprep.subr.mxu0 %v2306_v11  ;;  %2084 = vmatmul.mubr.msk.f32.vlgmr.msra.gmra.mrb[4].mxu1 %vm403_vm1, %v391_v32 }
  0x2e   : > { %2093 = vmatprep.mubr.msk.f32.mxu1 %vm2305_vm0, %v2306_v11 }
  0x2f   : > { %2073 = vmatmul.mubr.msk.f32.vlgmr.msra.gmra.mrb[4].mxu0 %vm403_vm1, %v391_v32 }
  0x30   : > { %2088 = vmatprep.mubr.msk.f32.mxu0 %vm2305_vm0, %v2306_v11 }
  0xf0   : > { %v550_v46 = vpop.f32.mrb[0].mxu1 }
  0xf1   : > { %v2041_v48 = vpop.f32.mrb[1].mxu1  ;;  %2087 = vmatpush3.xpose.msk.msra.mxu0 %vm403_vm1, %v550_v46  ;;  %2092 = vmatpush3.xpose.msk.msra.mxu1 %vm403_vm1, %v550_v46 }
  0xf2   : > { %v473_v42 = vpop.f32.mrb[0].mxu0  ;;  %2096 = vmatprep.subr.mxu0 %v2306_v11  ;;  %2101 = vmatprep.subr.mxu1 %v2306_v11 }
  0xf3   : > { %v474_v45 = vadd.f32 %v1934_v41, %v473_v42  ;;  %v2030_v47 = vpop.f32.mrb[1].mxu0  ;;  %v1517_v42 = vld [vmem:[%s2681_s7] sm:$0xff] }
  0xf5   : > { %v881_v49 = vmul.f32 %v1941_v43, %v474_v45  ;;  %v882_v50 = vmul.f32 %v1942_v44, %v474_v45  ;;  %v883_v53 = vmul.f32 %v1943_v51, %v474_v45  ;;  %v884_v54 = vmul.f32 %v1944_v52, %v474_v45  ;;  %v1518_v45 = vld [vmem:[%s2681_s7 + $0x8] sm:$0xff] }
  0xf7   : > { %2089 = vmatmul.mubr.msk.f32.vlgmr.msra.gmra.mrb[6].mxu0 %vm403_vm1, %v881_v49  ;;  %2094 = vmatmul.mubr.msk.f32.vlgmr.msra.gmra.mrb[6].mxu1 %vm403_vm1, %v882_v50  ;;  %v1520_v49 = vld [vmem:[%s2681_s7 + $0x18] sm:$0xff] }
  0xf8   : > { %2097 = vmatpush3.xpose.msk.msra.mxu0 %vm403_vm1, %v550_v46  ;;  %2102 = vmatpush3.xpose.msk.msra.mxu1 %vm403_vm1, %v550_v46  ;;  %v709_v57 = vpop.f32.mrb[2].mxu1  ;;  %v1519_v46 = vld [vmem:[%s2681_s7 + $0x10] sm:$0xff] }
  0xf9   : > { %2098 = vmatprep.mubr.msk.f32.mxu0 %vm2305_vm0, %v2306_v11  ;;  %2103 = vmatprep.mubr.msk.f32.mxu1 %vm2305_vm0, %v2306_v11  ;;  %v2063_v58 = vpop.f32.mrb[3].mxu1 }
  0xfa   : > { %v639_v55 = vpop.f32.mrb[2].mxu0  ;;  %2106 = vmatprep.subr.mxu0 %v2306_v11  ;;  %2111 = vmatprep.subr.mxu1 %v2306_v11 }
  0xfb   : > { %2099 = vmatmul.mubr.msk.f32.vlgmr.msra.gmra.mrb[8].mxu0 %vm403_vm1, %v883_v53  ;;  %2104 = vmatmul.mubr.msk.f32.vlgmr.msra.gmra.mrb[8].mxu1 %vm403_vm1, %v884_v54  ;;  %v2052_v56 = vpop.f32.mrb[3].mxu0 }
  0xfc   : > { %2107 = vmatpush3.msra.mxu0 %v639_v55  ;;  %2112 = vmatpush3.msra.mxu1 %v709_v57 }
  0xfd   : > { %2108 = vmatprep.mubr.msk.f32.mxu0 %vm2305_vm0, %v2306_v11  ;;  %2116 = vmatprep.subr.mxu0 %v2306_v11 }
  0xfe   : > { %2113 = vmatprep.mubr.msk.f32.mxu1 %vm2305_vm0, %v2306_v11  ;;  %2121 = vmatprep.subr.mxu1 %v2306_v11 }
 0x100   : > { %v2572_v61 = vpop.f32.mrb[4].mxu1 }
 0x101   : > { %v2085_v62 = vpop.f32.mrb[5].mxu1 }
 0x102   : > { %v779_v59 = vpop.f32.mrb[4].mxu0 }
 0x103   : > { %v2074_v60 = vpop.f32.mrb[5].mxu0 }
 0x1ca   : > { %v957_v63 = vpop.f32.mrb[6].mxu0  ;;  %v1030_v0 = vpop.f32.mrb[6].mxu1 }
 0x1cb   : > { %v2090_v1 = vpop.f32.mrb[7].mxu0  ;;  %v2095_v2 = vpop.f32.mrb[7].mxu1  ;;  %v1181_v3 = vsel %vm1180_vm2, %v957_v63, -inf  ;;  %v1184_v8 = vsel %vm1180_vm2, %v1030_v0, -inf }
 0x1cc   : > { %1182 = vmax.xlane.f32.xlu0 %v1181_v3 }
 0x1ce   : > { %v1103_v4 = vpop.f32.mrb[8].mxu0  ;;  %v1176_v5 = vpop.f32.mrb[8].mxu1 }
 0x1cf   : > { %v2100_v6 = vpop.f32.mrb[9].mxu0  ;;  %v2105_v7 = vpop.f32.mrb[9].mxu1  ;;  %v1187_v9 = vsel %vm1180_vm2, %v1103_v4, -inf  ;;  %v1190_v10 = vsel %vm1180_vm2, %v1176_v5, -inf }
 0x1d0   : > { %1185 = vmax.xlane.f32.xlu0 %v1184_v8  ;;  %1188 = vmax.xlane.f32.xlu1 %v1187_v9 }
 0x1d4   : > { %1191 = vmax.xlane.f32.xlu1 %v1190_v10 }
 0x259   : > { %v1183_v12 = vpop.xlane.xlu0 %1182 }
 0x25a   : > { %v1193_v13 = vsub.f32 %v957_v63, %v1183_v12 }
 0x25c   : > { %v1197_v14 = vmul.f32 1.442695, %v1193_v13 }
 0x25d   : > { %v1186_v15 = vpop.xlane.xlu0 %1185  ;;  %v1189_v16 = vpop.xlane.xlu1 %1188 }
 0x25e   : > { %2224 = vpow2.f32 %v1197_v14  ;;  %v1194_v17 = vsub.f32 %v1030_v0, %v1186_v15  ;;  %v1195_v18 = vsub.f32 %v1103_v4, %v1189_v16  ;;  %v1961_v4 = vld [vmem:[%s2682_s8] ss:$0 sm:$0xff] }
 0x260   : > { %v1199_v19 = vmul.f32 1.442695, %v1194_v17  ;;  %v1201_v20 = vmul.f32 1.442695, %v1195_v18 }
 0x261   : > { %v1192_v21 = vpop.xlane.xlu1 %1191 }
 0x262   : > { %2226 = vpow2.f32 %v1199_v19  ;;  %v1196_v22 = vsub.f32 %v1176_v5, %v1192_v21 }
 0x263   : > { %2228 = vpow2.f32 %v1201_v20 }
 0x264   : > { %v1203_v23 = vmul.f32 1.442695, %v1196_v22 }
 0x266   : > { %2230 = vpow2.f32 %v1203_v23 }
 0x268   : > { %v2225_v24 = vpop.eup %2224 }
 0x269   : > { %v1205_v25 = vsel %vm1180_vm2, %v2225_v24, 0.0 }
 0x26a   : > { %1206 = vadd.xlane.f32.xlu0 %v1205_v25 }
 0x26c   : > { %v2227_v26 = vpop.eup %2226 }
 0x26d   : > { %v2229_v27 = vpop.eup %2228  ;;  %v1208_v28 = vsel %vm1180_vm2, %v2227_v26, 0.0 }
 0x26e   : > { %1209 = vadd.xlane.f32.xlu1 %v1208_v28  ;;  %v1211_v29 = vsel %vm1180_vm2, %v2229_v27, 0.0 }
 0x26f   : > { %1212 = vadd.xlane.f32.xlu0 %v1211_v29 }
 0x270   : > { %v2231_v30 = vpop.eup %2230 }
 0x271   : > { %v1214_v31 = vsel %vm1180_vm2, %v2231_v30, 0.0 }
 0x272   : > { %1215 = vadd.xlane.f32.xlu1 %v1214_v31 }
 0x2f7   : > { %v1207_v32 = vpop.xlane.xlu0 %1206 }
 0x2f8   : > { %2232 = vrcp.f32 %v1207_v32 }
 0x2fb   : > { %v1210_v33 = vpop.xlane.xlu1 %1209 }
 0x2fc   : > { %v1213_v34 = vpop.xlane.xlu0 %1212  ;;  %2234 = vrcp.f32 %v1210_v33 }
 0x2fd   : > { %2236 = vrcp.f32 %v1213_v34 }
 0x2ff   : > { %v1216_v35 = vpop.xlane.xlu1 %1215 }
 0x300   : > { %2238 = vrcp.f32 %v1216_v35 }
 0x302   : > { %v2233_v36 = vpop.eup %2232 }
 0x303   : > { %v1221_v37 = vmul.f32 %v2233_v36, %v2225_v24 }
 0x305   : > { %2109 = vmatmul.mubr.msk.f32.vlgmr.msra.gmra.mrb[10].mxu0 %vm1180_vm2, %v1221_v37 }
 0x306   : > { %v2235_v38 = vpop.eup %2234  ;;  %2117 = vmatpush3.msra.mxu0 %v779_v59  ;;  %2118 = vmatprep.mubr.msk.f32.mxu0 %vm2305_vm0, %v2306_v11 }
 0x307   : > { %v2237_v39 = vpop.eup %2236  ;;  %v1222_v40 = vmul.f32 %v2235_v38, %v2227_v26  ;;  %2126 = vmatprep.subr.mxu0 %v2306_v11 }
 0x308   : > { %v1223_v41 = vmul.f32 %v2237_v39, %v2229_v27 }
 0x309   : > { %2114 = vmatmul.mubr.msk.f32.vlgmr.msra.gmra.mrb[10].mxu1 %vm1180_vm2, %v1222_v40 }
 0x30a   : > { %v2239_v43 = vpop.eup %2238  ;;  %2119 = vmatmul.mubr.msk.f32.vlgmr.msra.gmra.mrb[12].mxu0 %vm1180_vm2, %v1223_v41  ;;  %2122 = vmatpush3.msra.mxu1 %v2572_v61 }
 0x30b   : > { %v1224_v44 = vmul.f32 %v2239_v43, %v2231_v30  ;;  %2123 = vmatprep.mubr.msk.f32.mxu1 %vm2305_vm0, %v2306_v11  ;;  %2127 = vmatpush3.msra.mxu0 %v1517_v42 }
 0x30c   : > { %2128 = vmatprep.mubr.msk.f32.mxu0 %vm2305_vm0, %v2306_v11  ;;  %2131 = vmatprep.subr.mxu1 %v2306_v11 }
 0x30d   : > { %2124 = vmatmul.mubr.msk.f32.vlgmr.msra.gmra.mrb[12].mxu1 %vm1180_vm2, %v1224_v44  ;;  %2136 = vmatprep.subr.mxu0 %v2306_v11 }
 0x30e   : > { %2133 = vmatprep.mubr.msk.f32.mxu1 %vm2305_vm0, %v2306_v11  ;;  %2132 = vmatpush3.msra.mxu1 %v1518_v45 }
 0x30f   : > { %2141 = vmatprep.subr.mxu1 %v2306_v11 }
 0x3d8   : > { %v1294_v47 = vpop.f32.mrb[10].mxu0 }
 0x3d9   : > { %v2110_v48 = vpop.f32.mrb[11].mxu0  ;;  %2129 = vmatmul.mubr.msk.f32.vlgmr.msra.gmra.mrb[14].mxu0 %vm1180_vm2, %v1294_v47 }
 0x3da   : > { %2137 = vmatpush3.msra.mxu0 %v1519_v46  ;;  %2138 = vmatprep.mubr.msk.f32.mxu0 %vm2305_vm0, %v2306_v11 }
 0x3dc   : > { %v1367_v50 = vpop.f32.mrb[10].mxu1 }
 0x3dd   : > { %v1440_v51 = vpop.f32.mrb[12].mxu0  ;;  %v2115_v52 = vpop.f32.mrb[11].mxu1  ;;  %2134 = vmatmul.mubr.msk.f32.vlgmr.msra.gmra.mrb[14].mxu1 %vm1180_vm2, %v1367_v50 }
 0x3de   : > { %v2120_v53 = vpop.f32.mrb[13].mxu0  ;;  %2139 = vmatmul.mubr.msk.f32.vlgmr.msra.gmra.mrb[16].mxu0 %vm1180_vm2, %v1440_v51  ;;  %2142 = vmatpush3.msra.mxu1 %v1520_v49 }
 0x3df   : > { %2143 = vmatprep.mubr.msk.f32.mxu1 %vm2305_vm0, %v2306_v11 }
 0x3e0   : > { %v1513_v54 = vpop.f32.mrb[12].mxu1 }
 0x3e1   : > { %v2125_v55 = vpop.f32.mrb[13].mxu1  ;;  %2144 = vmatmul.mubr.msk.f32.vlgmr.msra.gmra.mrb[16].mxu1 %vm1180_vm2, %v1513_v54 }
 0x4ac   : > { %v1590_v56 = vpop.f32.mrb[14].mxu0 }
 0x4ad   : > { %v2130_v57 = vpop.f32.mrb[15].mxu0  ;;  %v1813_v59 = vsel %vm403_vm1, %v1590_v56, 0.0 }
 0x4b0   : > { %v1663_v58 = vpop.f32.mrb[14].mxu1 }
 0x4b1   : > { %v1814_v60 = vsel %vm403_vm1, %v1663_v58, 0.0  ;;  %v1736_v61 = vpop.f32.mrb[16].mxu0  ;;  %v2135_v62 = vpop.f32.mrb[15].mxu1 }
 0x4b2   : > { %v1815_v63 = vadd.f32 %v1814_v60, %v1813_v59  ;;  %v2140_v0 = vpop.f32.mrb[17].mxu0  ;;  %v1816_v11 = vsel %vm403_vm1, %v1736_v61, 0.0 }
 0x4b4   : > { %v1817_v1 = vadd.f32 %v1816_v11, %v1815_v63  ;;  %v1809_v2 = vpop.f32.mrb[16].mxu1 }
 0x4b5   : > { %v1818_v3 = vsel %vm403_vm1, %v1809_v2, 0.0  ;;  %v2145_v5 = vpop.f32.mrb[17].mxu1 }
 0x4b6   : > { %v1819_v6 = vadd.f32 %v1818_v3, %v1817_v1 }
 0x4b8   : > { %v1827_v7 = vadd.f32 %v1961_v4, %v1819_v6 }
 0x4ba   : > { %1828 = vst.msk [vmem:[%s376_s27] sm:$0xff] %vm403_vm1, %v1827_v7 }
 0x4bb   : > { %2253 = shalt.err (!%p2250_p3)
}
 0x4bc   : > { %s2254_s18 = scalar_lea.hbm %s2631_s12, 128  ;;  %s2258_s27 = scalar_lea.hbm %s2684_s10, 256 }
 0x4bd   : > { %p2255_p4 = scmp.ne.s32.totalorder %s2631_s12, %s2254_s18  ;;  %p2259_p9 = scmp.lt.u32.totalorder %s2631_s12, %s2684_s10 }
 0x4be   : > { %p2260_p10 = scmp.lt.u32.totalorder %s2258_s27, %s2254_s18  ;;  %p2262_p12 = scmp.lt.u32.totalorder %s2254_s18, %s2631_s12 }
 0x4bf   : > { %p2256_p7 = pnand %p2255_p4, %p2401_p5 }
 0x4c0   : > { %p2261_p11 = por %p2260_p10, %p2259_p9 }
 0x4c1   : > { %p2257_p8 = pneg %p2256_p7 }
 0x4c2   : > { %p2263_p13 = por %p2262_p12, %p2261_p11 }
 0x4c4   : > { %p2264_p0 = pnand %p2263_p13, %p2257_p8 }
 0x4c6   : > { %2267 = shalt.err (!%p2264_p0)
}
 0x4c7   : > { %2182 = dma.vmem_to_hbm [thread:$0]  (%p2401_p5), %s2633_s28, 128, %s2631_s12, %s1830_s21  }
 0x4c8 PF: > { %p2188_p1 = scmp.ge.s32.totalorder %s2302_s16, 2  ;;  %s1855_s3 = sand.u32 1, %s2290_s13  }
 0x4c9   : > { %s1856_s17 = scalar_lea.sflag [#allocation3], %s1855_s3 }
 0x4ca   : > { %p2185_p2 = pnand %p2188_p1, %p2405_p6 }
 0x4cc   : > { %2285 = dma.done.wait (!%p2185_p2), %s1856_s17, 128  }
 0x4cd   : > { %2287 = vsyncadd (!%p2185_p2), %s1856_s17, 4294967168  ;;  %p20_p3 = scmp.ge.s32.totalorder %s2388_s19, 4   ;;  %s2689_s13 = smov %s2294_s14 }
 0x4ce   : > { %s2690_s14 = smov %s2298_s15  ;;  %s2691_s15 = smov %s2399_s22 }
 0x4cf   : > { %s2692_s16 = smov %s2388_s19  ;;  %22 = sbr.rel (!%p20_p3) target bundleno = 5 (0x5), region = 101 }
 0x4d6   :  { %1861 = vsyncpa [#allocation3], 1 }
 0x4d7   :  { %1863 = vsyncpa [#allocation3 + $0x1], 1 }

</bundles_post_ra>
